<compile_context>
chip_gen: v6e
topology: v6e:2x2x1
jax: 0.10.0
libtpu: 0.0.40
codegen_flags: <defaults>
</compile_context>

<pallas_src>
import jax
import jax.numpy as jnp
from jax.experimental import pallas as pl
from jax.experimental.pallas import tpu as pltpu


def _round_up(x, m):
    return ((x + m - 1) // m) * m


def _choose_tq(hw, cap=512):
    """Largest query tile <= cap that divides HW and is a multiple of 8."""
    if hw <= cap:
        return hw
    for t in range(cap, 7, -1):
        if hw % t == 0 and t % 8 == 0:
            return t
    return hw  # fallback: single tile


# ---------------- kernel 1: fused phi/g 1x1-conv + 2x2 max-pool ----------------
def _proj_pool_kernel(xk_ref, wpg_ref, bpg_ref, phit_ref, g_ref):
    # xk_ref : (1, 4*HW4, Cp)  four 2x2-strided spatial views stacked along rows
    # wpg_ref: (Cp, 2*Cip), bpg_ref: (1, 2*Cip)   phi and g weights fused
    hw4 = g_ref.shape[1]
    cip = phit_ref.shape[1]
    # one large matmul covering all 4 views and both projections
    proj = jnp.dot(xk_ref[0], wpg_ref[...], preferred_element_type=jnp.float32)
    # 2x2 max-pool of a 1x1-conv output == elementwise max over the 4 views
    pooled = jnp.maximum(
        jnp.maximum(proj[0 * hw4:1 * hw4], proj[1 * hw4:2 * hw4]),
        jnp.maximum(proj[2 * hw4:3 * hw4], proj[3 * hw4:4 * hw4]),
    ) + bpg_ref[...]
    phi = pooled[:, :cip]                                    # (HW4, Cip) f32
    g = pooled[:, cip:]                                      # (HW4, Cip) f32
    # transpose phi once per batch so the attention matmul in kernel 2 is a
    # plain (TQ,Cip)x(Cip,HW4) contraction (no per-q-tile layout change).
    phit_ref[0] = jnp.transpose(phi).astype(phit_ref.dtype)  # (Cip, HW4) bf16
    g_ref[0] = g.astype(g_ref.dtype)                         # (HW4, Cip) bf16


# ---------------- kernel 2: attention over one query tile ----------------
def _attn_kernel(xq_ref, phit_ref, g_ref, wt_ref, bt_ref, ww_ref, bw_ref, out_ref):
    x = xq_ref[0]                                                    # (TQ, Cp) f32
    # theta projection (1x1 conv == per-pixel matmul)
    theta = jnp.dot(x, wt_ref[...], preferred_element_type=jnp.float32) + bt_ref[...]
    # attention scores: bf16 operands, f32 MXU accumulation
    f = jnp.dot(theta.astype(jnp.bfloat16), phit_ref[0],
                preferred_element_type=jnp.float32)                  # (TQ, HW4)
    # numerically-stable softmax; divide goes to the EUP reciprocal
    f = f - jnp.max(f, axis=-1, keepdims=True)
    e = jnp.exp(f)
    attn = e * pl.reciprocal(jnp.sum(e, axis=-1, keepdims=True), approx=True)
    # y = attn @ g: bf16 operands, f32 accumulation
    y = jnp.dot(attn.astype(jnp.bfloat16), g_ref[0],
                preferred_element_type=jnp.float32)                  # (TQ, Cip)
    # W(y) + residual
    wy = jnp.dot(y, ww_ref[...], preferred_element_type=jnp.float32) + bw_ref[...]
    out_ref[0] = (wy + x).astype(out_ref.dtype)


def nonlocal_block_embedded_gaussian(x_nchw, params, tq=None):
    """x_nchw: (B, C, H, W) float32. Returns (B, C, H, W) float32."""
    (w_t, b_t, w_p, b_p, w_g, b_g, w_W, b_W) = params
    B, C, H, W = x_nchw.shape
    if H % 2 != 0 or W % 2 != 0:
        raise ValueError("H and W must be even (MaxPool2d(2) sub-sampling).")
    Ci = w_t.shape[1]
    HW = H * W
    HW4 = (H // 2) * (W // 2)
    Cp = _round_up(C, 128)      # lane-dense channel padding (zero, inert)
    Cip = _round_up(Ci, 128)
    TQ = _choose_tq(HW) if tq is None else tq
    assert HW % TQ == 0
    NQ = HW // TQ

    # NHWC, channel-padded
    x_nhwc = jnp.transpose(x_nchw, (0, 2, 3, 1))                     # (B,H,W,C)
    if Cp != C:
        x_nhwc = jnp.pad(x_nhwc, ((0, 0), (0, 0), (0, 0), (0, Cp - C)))
    x_flat = x_nhwc.reshape(B, HW, Cp)

    # key side: the four 2x2-strided views stacked into ONE array (same bytes as x)
    xk = jnp.stack(
        [x_nhwc[:, 0::2, 0::2, :], x_nhwc[:, 0::2, 1::2, :],
         x_nhwc[:, 1::2, 0::2, :], x_nhwc[:, 1::2, 1::2, :]], axis=1)
    xk = xk.reshape(B, 4 * HW4, Cp)

    # padded / fused weights
    def padw(w, rows, cols):
        return jnp.pad(w, ((0, rows - w.shape[0]), (0, cols - w.shape[1])))
    w_t_p = padw(w_t, Cp, Cip)
    b_t_p = padw(b_t, 1, Cip)
    w_pg = jnp.concatenate([padw(w_p, Cp, Cip), padw(w_g, Cp, Cip)], axis=1)  # (Cp, 2Cip)
    b_pg = jnp.concatenate([padw(b_p, 1, Cip), padw(b_g, 1, Cip)], axis=1)    # (1, 2Cip)
    w_W_p = padw(w_W, Cip, Cp)
    b_W_p = padw(b_W, 1, Cp)

    # ---- kernel 1: phi^T and g (pooled key/value projections), once per batch ----
    phit, g = pl.pallas_call(
        _proj_pool_kernel,
        out_shape=(jax.ShapeDtypeStruct((B, Cip, HW4), jnp.bfloat16),
                   jax.ShapeDtypeStruct((B, HW4, Cip), jnp.bfloat16)),
        grid=(B,),
        in_specs=[
            pl.BlockSpec((1, 4 * HW4, Cp), lambda b: (b, 0, 0)),
            pl.BlockSpec((Cp, 2 * Cip), lambda b: (0, 0)),
            pl.BlockSpec((1, 2 * Cip), lambda b: (0, 0)),
        ],
        out_specs=(pl.BlockSpec((1, Cip, HW4), lambda b: (b, 0, 0)),
                   pl.BlockSpec((1, HW4, Cip), lambda b: (b, 0, 0))),
        compiler_params=pltpu.CompilerParams(dimension_semantics=("parallel",)),
    )(xk, w_pg, b_pg)

    # ---- kernel 2: attention, tiled over (batch, query-tile) ----
    out_flat = pl.pallas_call(
        _attn_kernel,
        out_shape=jax.ShapeDtypeStruct((B, HW, Cp), jnp.float32),
        grid=(B, NQ),
        in_specs=[
            pl.BlockSpec((1, TQ, Cp), lambda b, q: (b, q, 0)),        # x query tile
            pl.BlockSpec((1, Cip, HW4), lambda b, q: (b, 0, 0)),      # phi^T (resident per b)
            pl.BlockSpec((1, HW4, Cip), lambda b, q: (b, 0, 0)),      # g     (resident per b)
            pl.BlockSpec((Cp, Cip), lambda b, q: (0, 0)),             # theta weight
            pl.BlockSpec((1, Cip), lambda b, q: (0, 0)),              # theta bias
            pl.BlockSpec((Cip, Cp), lambda b, q: (0, 0)),             # W weight
            pl.BlockSpec((1, Cp), lambda b, q: (0, 0)),               # W bias
        ],
        out_specs=pl.BlockSpec((1, TQ, Cp), lambda b, q: (b, q, 0)),
        compiler_params=pltpu.CompilerParams(
            dimension_semantics=("parallel", "parallel")),
    )(x_flat, phit, g, w_t_p, b_t_p, w_W_p, b_W_p)

    out = out_flat[:, :, :C].reshape(B, H, W, C)
    return jnp.transpose(out, (0, 3, 1, 2))                           # NCHW


def _reference_jax(x_nchw, params):
    """Pure-JAX f32 reference of the same math (for verification)."""
    (w_t, b_t, w_p, b_p, w_g, b_g, w_W, b_W) = params
    B, C, H, W = x_nchw.shape
    x = jnp.transpose(x_nchw, (0, 2, 3, 1))                           # (B,H,W,C)

    def conv1x1(v, w, b):
        return jnp.einsum("bhwc,cd->bhwd", v, w) + b[0]

    def pool2x2(v):
        v = v.reshape(B, H // 2, 2, W // 2, 2, v.shape[-1])
        return jnp.max(v, axis=(2, 4))

    theta = conv1x1(x, w_t, b_t).reshape(B, H * W, -1)
    phi = pool2x2(conv1x1(x, w_p, b_p)).reshape(B, (H // 2) * (W // 2), -1)
    g = pool2x2(conv1x1(x, w_g, b_g)).reshape(B, (H // 2) * (W // 2), -1)
    f = jnp.einsum("bqc,bkc->bqk", theta, phi)
    attn = jax.nn.softmax(f, axis=-1)
    y = jnp.einsum("bqk,bkc->bqc", attn, g)
    wy = jnp.einsum("bqc,cd->bqd", y, w_W) + b_W[0]
    z = wy.reshape(B, H, W, C) + x
    return jnp.transpose(z, (0, 3, 1, 2))


def make_params(key, C, Ci, zero_W=True):
    ks = jax.random.split(key, 8)
    scale = 0.1
    w_t = scale * jax.random.normal(ks[0], (C, Ci), jnp.float32)
    b_t = scale * jax.random.normal(ks[1], (1, Ci), jnp.float32)
    w_p = scale * jax.random.normal(ks[2], (C, Ci), jnp.float32)
    b_p = scale * jax.random.normal(ks[3], (1, Ci), jnp.float32)
    w_g = scale * jax.random.normal(ks[4], (C, Ci), jnp.float32)
    b_g = scale * jax.random.normal(ks[5], (1, Ci), jnp.float32)
    if zero_W:
        # matches nn.init.constant_(self.W.weight, 0); constant_(self.W.bias, 0)
        w_W = jnp.zeros((Ci, C), jnp.float32)
        b_W = jnp.zeros((1, C), jnp.float32)
    else:
        w_W = scale * jax.random.normal(ks[6], (Ci, C), jnp.float32)
        b_W = scale * jax.random.normal(ks[7], (1, C), jnp.float32)
    return (w_t, b_t, w_p, b_p, w_g, b_g, w_W, b_W)


if __name__ == "__main__":
    key = jax.random.PRNGKey(0)
    k_x, k_p, k_x2 = jax.random.split(key, 3)

    # Module-faithful small case: in_channels=4 -> inter_channels=2, W conv zero.
    B, C, H, W = 2, 4, 16, 16
    Ci = C // 2
    x = jax.random.normal(k_x, (B, C, H, W), jnp.float32)
    params = make_params(k_p, C, Ci, zero_W=True)
    z = nonlocal_block_embedded_gaussian(x, params)
    jax.block_until_ready(z)
    z_ref = _reference_jax(x, params)
    assert jnp.allclose(z, z_ref, atol=1e-4, rtol=1e-4)

    # Nonzero-W variant (exercises full attention path), multiple q-tiles (tq=128).
    params_nz = make_params(k_p, C, Ci, zero_W=False)
    z_nz = nonlocal_block_embedded_gaussian(x, params_nz, tq=128)
    jax.block_until_ready(z_nz)
    z_nz_ref = _reference_jax(x, params_nz)
    # bf16 attention matmuls with f32 accumulation -> relaxed tolerance
    assert jnp.allclose(z_nz, z_nz_ref, atol=2e-2, rtol=2e-2)

    # Larger spatial case to exercise the default q-tiling path (HW=1024, TQ=512).
    x2 = jax.random.normal(k_x2, (1, C, 32, 32), jnp.float32)
    z2 = nonlocal_block_embedded_gaussian(x2, params_nz)
    jax.block_until_ready(z2)
    z2_ref = _reference_jax(x2, params_nz)
    assert jnp.allclose(z2, z2_ref, atol=2e-2, rtol=2e-2)

    print("KERNEL_OK")
</pallas_src>

<mosaic_0001>
module attributes {stable_mosaic.version = 11 : i64} {
  func.func @_proj_pool_kernel(%arg0: i32, %arg1: memref<1x256x128xf32, #tpu.memory_space<vmem>>, %arg2: memref<128x256xf32, #tpu.memory_space<vmem>>, %arg3: memref<1x256xf32, #tpu.memory_space<vmem>>, %arg4: memref<1x128x64xbf16, #tpu.memory_space<vmem>>, %arg5: memref<1x64x128xbf16, #tpu.memory_space<vmem>>) attributes {dimension_semantics = [#tpu.dimension_semantics<parallel>], iteration_bounds = array<i64: 2>, scalar_prefetch = 0 : i64, scratch_operands = 0 : i64, tpu.core_type = #tpu.core_type<tc>, window_params = [{transform_indices = @transform_0, window_bounds = array<i64: 1, 256, 128>}, {pipeline_mode = #tpu.pipeline_mode<synchronous>, transform_indices = @transform_1, window_bounds = array<i64: 128, 256>}, {pipeline_mode = #tpu.pipeline_mode<synchronous>, transform_indices = @transform_2, window_bounds = array<i64: 1, 256>}, {transform_indices = @transform_3, window_bounds = array<i64: 1, 128, 64>}, {transform_indices = @transform_4, window_bounds = array<i64: 1, 64, 128>}]} {
    %c0 = arith.constant 0 : index
    %c0_0 = arith.constant 0 : index
    %c0_1 = arith.constant 0 : index
    %0 = vector.load %arg1[%c0, %c0_0, %c0_1] : memref<1x256x128xf32, #tpu.memory_space<vmem>>, vector<1x256x128xf32>
    %1 = vector.shape_cast %0 : vector<1x256x128xf32> to vector<256x128xf32>
    %c0_2 = arith.constant 0 : index
    %c0_3 = arith.constant 0 : index
    %2 = vector.load %arg2[%c0_2, %c0_3] : memref<128x256xf32, #tpu.memory_space<vmem>>, vector<128x256xf32>
    %cst = arith.constant dense<0.000000e+00> : vector<256x256xf32>
    %3 = tpu.matmul %1, %2, %cst {dimension_numbers = #tpu.dot_dimension_numbers<[1], [0], [0], [1], [0, 0, 1, 1], [], []>} : vector<256x128xf32>, vector<128x256xf32>, vector<256x256xf32> -> vector<256x256xf32>
    %4 = vector.extract_strided_slice %3 {offsets = [0, 0], sizes = [64, 256], strides = [1, 1]} : vector<256x256xf32> to vector<64x256xf32>
    %5 = vector.extract_strided_slice %3 {offsets = [64, 0], sizes = [64, 256], strides = [1, 1]} : vector<256x256xf32> to vector<64x256xf32>
    %6 = arith.maximumf %4, %5 : vector<64x256xf32>
    %7 = vector.extract_strided_slice %3 {offsets = [128, 0], sizes = [64, 256], strides = [1, 1]} : vector<256x256xf32> to vector<64x256xf32>
    %8 = vector.extract_strided_slice %3 {offsets = [192, 0], sizes = [64, 256], strides = [1, 1]} : vector<256x256xf32> to vector<64x256xf32>
    %9 = arith.maximumf %7, %8 : vector<64x256xf32>
    %10 = arith.maximumf %6, %9 : vector<64x256xf32>
    %c0_4 = arith.constant 0 : index
    %c0_5 = arith.constant 0 : index
    %11 = vector.load %arg3[%c0_4, %c0_5] : memref<1x256xf32, #tpu.memory_space<vmem>>, vector<1x256xf32>
    %12 = vector.broadcast %11 : vector<1x256xf32> to vector<64x256xf32>
    %13 = arith.addf %10, %12 : vector<64x256xf32>
    %14 = vector.extract_strided_slice %13 {offsets = [0, 0], sizes = [64, 128], strides = [1, 1]} : vector<64x256xf32> to vector<64x128xf32>
    %15 = vector.extract_strided_slice %13 {offsets = [0, 128], sizes = [64, 128], strides = [1, 1]} : vector<64x256xf32> to vector<64x128xf32>
    %16 = tpu.transpose %14, [1, 0] : vector<64x128xf32> -> vector<128x64xf32>
    %17 = arith.truncf %16 : vector<128x64xf32> to vector<128x64xbf16>
    %c0_6 = arith.constant 0 : index
    %c0_7 = arith.constant 0 : index
    %c0_8 = arith.constant 0 : index
    %18 = vector.load %arg4[%c0_6, %c0_7, %c0_8] : memref<1x128x64xbf16, #tpu.memory_space<vmem>>, vector<1x128x64xbf16>
    %19 = vector.shape_cast %18 : vector<1x128x64xbf16> to vector<128x64xbf16>
    %20 = vector.shape_cast %17 : vector<128x64xbf16> to vector<1x128x64xbf16>
    tpu.vector_store %arg4[%c0_6, %c0_7, %c0_8], %20 {strides = array<i32>} : memref<1x128x64xbf16, #tpu.memory_space<vmem>>, vector<1x128x64xbf16>,
    %21 = arith.truncf %15 : vector<64x128xf32> to vector<64x128xbf16>
    %c0_9 = arith.constant 0 : index
    %c0_10 = arith.constant 0 : index
    %c0_11 = arith.constant 0 : index
    %22 = vector.load %arg5[%c0_9, %c0_10, %c0_11] : memref<1x64x128xbf16, #tpu.memory_space<vmem>>, vector<1x64x128xbf16>
    %23 = vector.shape_cast %22 : vector<1x64x128xbf16> to vector<64x128xbf16>
    %24 = vector.shape_cast %21 : vector<64x128xbf16> to vector<1x64x128xbf16>
    tpu.vector_store %arg5[%c0_9, %c0_10, %c0_11], %24 {strides = array<i32>} : memref<1x64x128xbf16, #tpu.memory_space<vmem>>, vector<1x64x128xbf16>,
    return
  }
  func.func @transform_0(%arg0: i32) -> (i32, i32, i32) {
    %c0_i32 = arith.constant 0 : i32
    %c0_i32_0 = arith.constant 0 : i32
    %c0_i32_1 = arith.constant 0 : i32
    return %arg0, %c0_i32, %c0_i32_0 : i32, i32, i32
  }
  func.func @transform_1(%arg0: i32) -> (i32, i32) {
    %c0_i32 = arith.constant 0 : i32
    %c0_i32_0 = arith.constant 0 : i32
    %c0_i32_1 = arith.constant 0 : i32
    return %c0_i32, %c0_i32_0 : i32, i32
  }
  func.func @transform_2(%arg0: i32) -> (i32, i32) {
    %c0_i32 = arith.constant 0 : i32
    %c0_i32_0 = arith.constant 0 : i32
    %c0_i32_1 = arith.constant 0 : i32
    return %c0_i32, %c0_i32_0 : i32, i32
  }
  func.func @transform_3(%arg0: i32) -> (i32, i32, i32) {
    %c0_i32 = arith.constant 0 : i32
    %c0_i32_0 = arith.constant 0 : i32
    %c0_i32_1 = arith.constant 0 : i32
    return %arg0, %c0_i32, %c0_i32_0 : i32, i32, i32
  }
  func.func @transform_4(%arg0: i32) -> (i32, i32, i32) {
    %c0_i32 = arith.constant 0 : i32
    %c0_i32_0 = arith.constant 0 : i32
    %c0_i32_1 = arith.constant 0 : i32
    return %arg0, %c0_i32, %c0_i32_0 : i32, i32, i32
  }
}

</mosaic_0001>

<bundles_post_ra>
// kernel: tpu_custom_call.1
= control target key start
LH: loop header
LB: loop body
LE: loop exit
PB: predicated region body
PF: predicated region fallthrough
CT: control target
= control target key end

     0   :  { %10 = vsyncpa [#allocation3], 0  ;;  %s1656_s0 = inlined_call_operand.hbm [shape: f32[2,256,128], index: 0, kind: input, shape index: {}]   ;;  %s1657_s1 = inlined_call_operand.hbm [shape: f32[128,256], index: 1, kind: input, shape index: {}]   ;;  %s1658_s2 = inlined_call_operand.vmem [shape: f32[1,256], index: 2, kind: input, shape index: {}]   ;;  %s1659_s3 = inlined_call_operand.vmem [shape: bf16[2,128,64], index: 3, kind: output, shape index: {0}]   ;;  %s1660_s4 = inlined_call_operand.hbm [shape: bf16[2,64,128], index: 4, kind: output, shape index: {1}]  }
   0x1   :  { %12 = vsyncpa [#allocation3 + $0x1], 0 }
   0x2   :  { %13 = vsyncpa [#allocation6], 0 }
   0x3   :  { %14 = vsyncpa [#allocation4], 0 }
   0x4   :  { %16 = vsyncpa [#allocation4 + $0x1], 0  ;;  %s1271_s15 = smov 0   ;;  %s1273_s16 = smov 0  }
   0x5   :  { %s1275_s17 = smov 0   ;;  %s1277_s18 = smov 0  }
   0x6 LB: > { %s1292_s19 = sadd.s32 4294967295, %s1234_s18   ;;  %s924_s20 = sadd.s32 4294967294, %s1234_s18   ;;  %s1234_s18 = sphi %s1277_s18, %s1682_s18   ;;  %s1230_s17 = sphi %s1275_s17, %s1681_s17   ;;  %s1226_s16 = sphi %s1273_s16, %s1680_s16   ;;  %s1222_s15 = sphi %s1271_s15, %s1679_s15  }
   0x7   : > { %p42_p0 = scmp.ne.s32.totalorder %s1226_s16, %s1222_s15  ;;  %p1661_p1 = scmp.eq.s32.totalorder %s1292_s19, 0 }
   0x8   : > { %p140_p3 = scmp.eq.s32.totalorder %s924_s20, 1  ;;  %p925_p5 = scmp.ge.s32.totalorder %s1234_s18, 1 }
   0x9   : > { %p1301_p4 = por %p1661_p1, %p42_p0  ;;  %p147_p7 = scmp.lt.s32.totalorder %s1234_s18, 3 }
   0xa   : > { %p1306_p6 = por %p140_p3, %p42_p0  ;;  %s1236_s24 = smov [#allocation5]  }
   0xb   : > { %s1665_s21 = scalar_select %p1301_p4, 1, 0 }
   0xc   : > { %s1666_s22 = scalar_select %p1306_p6, 1, 0 }
   0xd   : > { %p1311_p8 = pnand %p925_p5, %p147_p7  ;;  %s159_s25 = sshll.u32 %s1236_s24, 4  ;;  %s160_s25 = int_to_ptr.vmem [resolvable:$true] %s159_s25 }
   0xe   : > { %s1325_s27 = sadd.s32 1, %s1234_s18   ;;  %s29_s28 = sadd.s32 1, %s1230_s17 }
   0xf   : > { %s1667_s23 = scalar_select %p1311_p8, 1, 0 }
  0x10   : > { %p1056_p9 = pneg %p1311_p8  ;;  %s26_s29 = ssub.s32 %s1234_s18, %s1325_s27 }
  0x11   : > { %s1123_s30 = scalar_lea.vmem %s160_s25, 4096  ;;  %p1131_p5 = scmp.lt.s32.totalorder %s160_s25, %s160_s25 }
  0x12   : > { %p1320_p11 = pnand %p1056_p9, %p1661_p1  ;;  %p1124_p13 = scmp.ne.s32.totalorder %s160_s25, %s1123_s30 }
  0x13   : > { %p1132_p7 = scmp.lt.s32.totalorder %s1123_s30, %s1123_s30 }
  0x14   : > { %p1114_p12 = pneg %p1320_p11 }
  0x15   : > { %p1133_p10 = por %p1132_p7, %p1131_p5 }
  0x16   : > { %p1126_p0 = pnand %p1124_p13, %p1114_p12 }
  0x18   : > { %p1127_p3 = pneg %p1126_p0 }
  0x1a   : > { %p1134_p2 = pnand %p1133_p10, %p1127_p3 }
  0x1c   : > { %1137 = shalt.err (!%p1134_p2)
}
  0x1d   : > { %s1237_s5 = smov 256   ;;  %s1238_s6 = smov 16  }
  0x1e   : > { %1059 = dma.hbm_to_vmem [thread:$0]  (!%p1320_p11), %s1657_s1, 4096, %s160_s25, [#allocation6], %s1237_s5, %s1237_s5, %s1238_s6  }
  0x1f   : > { %p27_p9 = scmp.eq.s32.totalorder %s26_s29, 0  ;;  %p36_p12 = scmp.ne.s32.totalorder %s1230_s17, %s1226_s16 }
  0x20   : > { %p37_p10 = scmp.eq.s32.totalorder %s1234_s18, 0  ;;  %p1069_p2 = scmp.lt.s32.totalorder %s1234_s18, 2 }
  0x21   : > { %s1342_s9 = scalar_select %p27_p9, %s1230_s17, %s29_s28  }
  0x22   : > { %p38_p13 = por %p37_p10, %p36_p12  ;;  %p1669_p0 = scmp.eq.s32.totalorder %s1292_s19, 1 }
  0x23   : > { %s176_s11 = sand.u32 1, %s1230_s17   ;;  %s966_s12 = sshll.u32 %s1234_s18, 12 }
  0x24   : > { %p1346_p3 = por %p1669_p0, %p36_p12  ;;  %s928_s13 = sshll.u32 %s176_s11, 8 }
  0x25   : > { %s1355_s24 = scalar_lea.hbm %s1656_s0, %s966_s12  ;;  %s180_s25 = scalar_lea.vmem [#allocation2], %s928_s13 }
  0x26   : > { %s1670_s10 = scalar_select %p1346_p3, 1, 0 }
  0x27   : > { %s187_s26 = sshll.u32 %s180_s25, 4  ;;  %p1357_p11 = pnand %p1069_p2, %p38_p13  ;;  %s1361_s26 = int_to_ptr.vmem [resolvable:$true] %s187_s26 }
  0x28   : > { %s1363_s29 = scalar_lea.sflag [#allocation3], %s176_s11  ;;  %s1138_s30 = scalar_lea.hbm %s1355_s24, 4096 }
  0x29   : > { %p1139_p5 = scmp.ne.s32.totalorder %s1355_s24, %s1138_s30  ;;  %p1140_p7 = pneg %p1357_p11 }
  0x2a   : > { %s1143_s7 = scalar_lea.hbm %s1656_s0, 8192  ;;  %p1144_p10 = scmp.lt.s32.totalorder %s1355_s24, %s1656_s0 }
  0x2b   : > { %p1141_p9 = pnand %p1140_p7, %p1139_p5  ;;  %p1145_p2 = scmp.lt.s32.totalorder %s1143_s7, %s1138_s30 }
  0x2d   : > { %p1142_p12 = pneg %p1141_p9  ;;  %p1146_p13 = por %p1145_p2, %p1144_p10 }
  0x2f   : > { %p1147_p0 = pnand %p1146_p13, %p1142_p12 }
  0x31   : > { %1150 = shalt.err (!%p1147_p0)
}
  0x32   : > { %s1151_s11 = scalar_lea.vmem %s1361_s26, 4096  ;;  %s1239_s13 = smov [#allocation2]  }
  0x33   : > { %p1152_p1 = scmp.ne.s32.totalorder %s1361_s26, %s1151_s11  ;;  %s1156_s14 = sshll.u32 %s1239_s13, 4  ;;  %s1157_s14 = int_to_ptr.vmem [resolvable:$false] %s1156_s14 }
  0x34   : > { %s1158_s20 = scalar_lea.vmem %s1157_s14, 8192  ;;  %p1159_p9 = scmp.lt.s32.totalorder %s1361_s26, %s1157_s14 }
  0x35   : > { %p1154_p6 = pnand %p1152_p1, %p1140_p7  ;;  %p1160_p3 = scmp.lt.s32.totalorder %s1158_s20, %s1151_s11 }
  0x37   : > { %p1155_p5 = pneg %p1154_p6  ;;  %p1161_p4 = por %p1160_p3, %p1159_p9 }
  0x39   : > { %p1162_p8 = pnand %p1161_p4, %p1155_p5 }
  0x3b   : > { %1165 = shalt.err (!%p1162_p8)
}
  0x3c   : > { %s1240_s25 = smov 128   ;;  %s1241_s30 = smov 8  }
  0x3d   : > { %1063 = dma.hbm_to_vmem [thread:$0]  (!%p1357_p11), %s1355_s24, 4096, %s1361_s26, %s1363_s29, %s1240_s25, %s1240_s25, %s1241_s30  }
  0x3e   : > { %p1672_p1 = scmp.ne.s32.totalorder %s1667_s23, 0 }
  0x3f   : > { %s1387_s5 = sand.u32 (!%p1672_p1), 1, %s1226_s16   ;;  %p1673_p4 = scmp.ne.s32.totalorder (!%p1672_p1), %s1665_s21, 0 }
  0x40   : > { %199 = sbr.rel (%p1672_p1) target bundleno = 527 (0x20f), region = 32  ;;  %s932_s6 = sshll.u32 (!%p1672_p1), %s1387_s5, 8 }
  0x41   : > { %s202_s7 = scalar_lea.sflag (!%p1672_p1), [#allocation3], %s1387_s5  ;;  %s1391_s8 = scalar_lea.vmem (!%p1672_p1), [#allocation2], %s932_s6 }
  0x45   : > { %1209 = dma.done.wait (%p1673_p4), %s202_s7, 4096  }
  0x46   : > { %1211 = vsyncadd (%p1673_p4), %s202_s7, 4294963200  ;;  %p1674_p6 = scmp.eq.s32.totalorder %s1292_s19, 0 }
  0x48   : > { %1213 = dma.done.wait (%p1674_p6), [#allocation6], 4096   ;;  %p1675_p8 = pmov %p1674_p6 }
  0x49   : > { %v1242_v0 = vmov 0.0   ;;  %v307_v1 = vld [vmem:[#allocation5 + $0xf8] sm:$0xff]  ;;  %v306_v2 = vld [vmem:[#allocation5 + $0xf0] sm:$0xff]  ;;  %v305_v3 = vld [vmem:[#allocation5 + $0xe8] sm:$0xff]  ;;  %s934_s24 = sshll.u32 %s1387_s5, 5  ;;  %s992_s29 = sshll.u32 %s1292_s19, 9 }
  0x4a   : > { %1215 = vsyncadd (%p1675_p8), [#allocation6], 4294963200  ;;  %372 = vmatprep.mubr.f32.mxu0 %v1242_v0  ;;  %468 = vmatprep.mubr.f32.mxu1 %v1242_v0  ;;  %v304_v4 = vld [vmem:[#allocation5 + $0xe0] sm:$0xff]  ;;  %v303_v5 = vld [vmem:[#allocation5 + $0xd8] sm:$0xff]  ;;  %s1532_s26 = scalar_lea.vmem [#allocation7], %s934_s24  ;;  %s1574_s13 = scalar_lea.hbm %s1660_s4, %s992_s29 }
  0x4b   : > { %308 = vmatprep.subr.mxu0 %v307_v1  ;;  %1016 = vmatprep.subr.mxu1 %v307_v1  ;;  %v302_v6 = vld [vmem:[#allocation5 + $0xd0] sm:$0xff]  ;;  %v301_v7 = vld [vmem:[#allocation5 + $0xc8] sm:$0xff]  ;;  %v300_v8 = vld [vmem:[#allocation5 + $0xc0] sm:$0xff]  ;;  %s816_s28 = sshll.u32 %s1532_s26, 4  ;;  %s800_s14 = scalar_lea.sflag [#allocation4], %s1387_s5  ;;  %s1568_s28 = int_to_ptr.vmem [resolvable:$true] %s816_s28 }
  0x4c   : > { %309 = vmatpush1.msra.mxu0 %v306_v2  ;;  %1032 = vmatpush1.msra.mxu1 %v306_v2  ;;  %v299_v9 = vld [vmem:[#allocation5 + $0xb8] sm:$0xff]  ;;  %v298_v10 = vld [vmem:[#allocation5 + $0xb0] sm:$0xff]  ;;  %v297_v11 = vld [vmem:[#allocation5 + $0xa8] sm:$0xff]  ;;  %s1166_s20 = scalar_lea.vmem %s1568_s28, 512  ;;  %p1676_p11 = scmp.ne.s32.totalorder %s1670_s10, 0 }
  0x4d   : > { %310 = vmatprep.subr.mxu0 %v305_v3  ;;  %1017 = vmatprep.subr.mxu1 %v305_v3  ;;  %v296_v12 = vld [vmem:[#allocation5 + $0xa0] sm:$0xff]  ;;  %v295_v13 = vld [vmem:[#allocation5 + $0x98] sm:$0xff]  ;;  %v294_v14 = vld [vmem:[#allocation5 + $0x90] sm:$0xff]  ;;  %p1167_p3 = scmp.ne.s32.totalorder %s1568_s28, %s1166_s20  ;;  %s1243_s25 = smov [#allocation7]  }
  0x4e   : > { %311 = vmatpush1.msra.mxu0 %v304_v4  ;;  %1033 = vmatpush1.msra.mxu1 %v304_v4  ;;  %v293_v15 = vld [vmem:[#allocation5 + $0x88] sm:$0xff]  ;;  %v292_v16 = vld [vmem:[#allocation5 + $0x80] sm:$0xff]  ;;  %v291_v17 = vld [vmem:[#allocation5 + $0x78] sm:$0xff]  ;;  %s1170_s30 = sshll.u32 %s1243_s25, 4  ;;  %s1171_s30 = int_to_ptr.vmem [resolvable:$false] %s1170_s30 }
  0x4f   : > { %312 = vmatprep.subr.mxu0 %v303_v5  ;;  %1018 = vmatprep.subr.mxu1 %v303_v5  ;;  %v290_v18 = vld [vmem:[#allocation5 + $0x70] sm:$0xff]  ;;  %v289_v19 = vld [vmem:[#allocation5 + $0x68] sm:$0xff]  ;;  %v288_v20 = vld [vmem:[#allocation5 + $0x60] sm:$0xff]  ;;  %p1168_p7 = pnand %p1167_p3, %p1676_p11  ;;  %s1172_s6 = scalar_lea.vmem %s1171_s30, 1024 }
  0x50   : > { %313 = vmatpush1.msra.mxu0 %v302_v6  ;;  %1034 = vmatpush1.msra.mxu1 %v302_v6  ;;  %v287_v21 = vld [vmem:[#allocation5 + $0x58] sm:$0xff]  ;;  %v286_v22 = vld [vmem:[#allocation5 + $0x50] sm:$0xff]  ;;  %v285_v23 = vld [vmem:[#allocation5 + $0x48] sm:$0xff]  ;;  %p1173_p10 = scmp.lt.s32.totalorder %s1568_s28, %s1171_s30  ;;  %p1174_p2 = scmp.lt.s32.totalorder %s1172_s6, %s1166_s20 }
  0x51   : > { %314 = vmatprep.subr.mxu0 %v301_v7  ;;  %1019 = vmatprep.subr.mxu1 %v301_v7  ;;  %v284_v24 = vld [vmem:[#allocation5 + $0x40] sm:$0xff]  ;;  %v283_v25 = vld [vmem:[#allocation5 + $0x38] sm:$0xff]  ;;  %v282_v26 = vld [vmem:[#allocation5 + $0x30] sm:$0xff]  ;;  %p1169_p12 = pneg %p1168_p7 }
  0x52   : > { %315 = vmatpush1.msra.mxu0 %v300_v8  ;;  %1035 = vmatpush1.msra.mxu1 %v300_v8  ;;  %v281_v27 = vld [vmem:[#allocation5 + $0x28] sm:$0xff]  ;;  %v280_v28 = vld [vmem:[#allocation5 + $0x20] sm:$0xff]  ;;  %v279_v29 = vld [vmem:[#allocation5 + $0x18] sm:$0xff]  ;;  %p1175_p13 = por %p1174_p2, %p1173_p10 }
  0x53   : > { %316 = vmatprep.subr.mxu0 %v299_v9  ;;  %1020 = vmatprep.subr.mxu1 %v299_v9  ;;  %v278_v30 = vld [vmem:[#allocation5 + $0x10] sm:$0xff]  ;;  %v277_v31 = vld [vmem:[#allocation5 + $0x8] sm:$0xff]  ;;  %v276_v32 = vld [vmem:[#allocation5] sm:$0xff] }
  0x54   : > { %317 = vmatpush1.msra.mxu0 %v298_v10  ;;  %1036 = vmatpush1.msra.mxu1 %v298_v10  ;;  %v244_v33 = vld [vmem:[%s1391_s8] sm:$0xff]  ;;  %v245_v35 = vld [vmem:[%s1391_s8 + $0x8] sm:$0xff]  ;;  %v246_v37 = vld [vmem:[%s1391_s8 + $0x10] sm:$0xff]  ;;  %p1176_p0 = pnand %p1175_p13, %p1169_p12 }
  0x55   : > { %318 = vmatprep.subr.mxu0 %v297_v11  ;;  %1021 = vmatprep.subr.mxu1 %v297_v11  ;;  %v260_v34 = vld [vmem:[%s1391_s8 + $0x80] sm:$0xff]  ;;  %v261_v36 = vld [vmem:[%s1391_s8 + $0x88] sm:$0xff]  ;;  %v262_v38 = vld [vmem:[%s1391_s8 + $0x90] sm:$0xff] }
  0x56   : > { %319 = vmatpush1.msra.mxu0 %v296_v12  ;;  %1037 = vmatpush1.msra.mxu1 %v296_v12  ;;  %v247_v39 = vld [vmem:[%s1391_s8 + $0x18] sm:$0xff]  ;;  %v248_v41 = vld [vmem:[%s1391_s8 + $0x20] sm:$0xff]  ;;  %v249_v43 = vld [vmem:[%s1391_s8 + $0x28] sm:$0xff] }
  0x57   : > { %320 = vmatprep.subr.mxu0 %v295_v13  ;;  %1022 = vmatprep.subr.mxu1 %v295_v13  ;;  %v263_v40 = vld [vmem:[%s1391_s8 + $0x98] sm:$0xff]  ;;  %v264_v42 = vld [vmem:[%s1391_s8 + $0xa0] sm:$0xff]  ;;  %v265_v44 = vld [vmem:[%s1391_s8 + $0xa8] sm:$0xff] }
  0x58   : > { %321 = vmatpush1.msra.mxu0 %v294_v14  ;;  %1038 = vmatpush1.msra.mxu1 %v294_v14  ;;  %v250_v45 = vld [vmem:[%s1391_s8 + $0x30] sm:$0xff]  ;;  %v251_v47 = vld [vmem:[%s1391_s8 + $0x38] sm:$0xff]  ;;  %v252_v49 = vld [vmem:[%s1391_s8 + $0x40] sm:$0xff] }
  0x59   : > { %322 = vmatprep.subr.mxu0 %v293_v15  ;;  %1023 = vmatprep.subr.mxu1 %v293_v15  ;;  %v266_v46 = vld [vmem:[%s1391_s8 + $0xb0] sm:$0xff]  ;;  %v267_v48 = vld [vmem:[%s1391_s8 + $0xb8] sm:$0xff]  ;;  %v268_v50 = vld [vmem:[%s1391_s8 + $0xc0] sm:$0xff] }
  0x5a   : > { %323 = vmatpush1.msra.mxu0 %v292_v16  ;;  %1039 = vmatpush1.msra.mxu1 %v292_v16  ;;  %v253_v51 = vld [vmem:[%s1391_s8 + $0x48] sm:$0xff]  ;;  %v254_v53 = vld [vmem:[%s1391_s8 + $0x50] sm:$0xff]  ;;  %v255_v55 = vld [vmem:[%s1391_s8 + $0x58] sm:$0xff] }
  0x5b   : > { %324 = vmatprep.subr.mxu0 %v291_v17  ;;  %1024 = vmatprep.subr.mxu1 %v291_v17  ;;  %v269_v52 = vld [vmem:[%s1391_s8 + $0xc8] sm:$0xff]  ;;  %v270_v54 = vld [vmem:[%s1391_s8 + $0xd0] sm:$0xff]  ;;  %v271_v56 = vld [vmem:[%s1391_s8 + $0xd8] sm:$0xff] }
  0x5c   : > { %325 = vmatpush1.msra.mxu0 %v290_v18  ;;  %1040 = vmatpush1.msra.mxu1 %v290_v18  ;;  %v256_v57 = vld [vmem:[%s1391_s8 + $0x60] sm:$0xff]  ;;  %v257_v59 = vld [vmem:[%s1391_s8 + $0x68] sm:$0xff]  ;;  %v258_v61 = vld [vmem:[%s1391_s8 + $0x70] sm:$0xff] }
  0x5d   : > { %326 = vmatprep.subr.mxu0 %v289_v19  ;;  %1025 = vmatprep.subr.mxu1 %v289_v19  ;;  %v272_v58 = vld [vmem:[%s1391_s8 + $0xe0] sm:$0xff]  ;;  %v273_v60 = vld [vmem:[%s1391_s8 + $0xe8] sm:$0xff]  ;;  %v274_v62 = vld [vmem:[%s1391_s8 + $0xf0] sm:$0xff] }
  0x5e   : > { %327 = vmatpush1.msra.mxu0 %v288_v20  ;;  %1041 = vmatpush1.msra.mxu1 %v288_v20  ;;  %v259_v63 = vld [vmem:[%s1391_s8 + $0x78] sm:$0xff] }
  0x5f   : > { %328 = vmatprep.subr.mxu0 %v287_v21  ;;  %1026 = vmatprep.subr.mxu1 %v287_v21  ;;  %v275_v1 = vld [vmem:[%s1391_s8 + $0xf8] sm:$0xff] }
  0x60   : > { %329 = vmatpush1.msra.mxu0 %v286_v22  ;;  %1042 = vmatpush1.msra.mxu1 %v286_v22 }
  0x61   : > { %330 = vmatprep.subr.mxu0 %v285_v23  ;;  %1027 = vmatprep.subr.mxu1 %v285_v23  ;;  %v615_v23 = vlaneseq }
  0x62   : > { %331 = vmatpush1.msra.mxu0 %v284_v24  ;;  %1043 = vmatpush1.msra.mxu1 %v284_v24 }
  0x63   : > { %332 = vmatprep.subr.mxu0 %v283_v25  ;;  %1028 = vmatprep.subr.mxu1 %v283_v25 }
  0x64   : > { %333 = vmatpush1.msra.mxu0 %v282_v26  ;;  %1044 = vmatpush1.msra.mxu1 %v282_v26 }
  0x65   : > { %334 = vmatprep.subr.mxu0 %v281_v27  ;;  %1029 = vmatprep.subr.mxu1 %v281_v27 }
  0x66   : > { %335 = vmatpush1.msra.mxu0 %v280_v28  ;;  %1045 = vmatpush1.msra.mxu1 %v280_v28  ;;  %v616_v28 = vshrl.u32 %v615_v23, 7 }
  0x67   : > { %336 = vmatprep.subr.mxu0 %v279_v29  ;;  %1030 = vmatprep.subr.mxu1 %v279_v29 }
  0x68   : > { %337 = vmatpush1.msra.mxu0 %v278_v30  ;;  %1046 = vmatpush1.msra.mxu1 %v278_v30 }
  0x69   : > { %338 = vmatprep.subr.mxu0 %v277_v31  ;;  %1031 = vmatprep.subr.mxu1 %v277_v31 }
  0x6a   : > { %339 = vmatpush1.msra.mxu0 %v276_v32  ;;  %1047 = vmatpush1.msra.mxu1 %v276_v32 }
  0x6b   : > { %373 = vmatmul.mubr.f32.vlgmr.msra.gmra.mxu0 %v244_v33  ;;  %469 = vmatmul.mubr.f32.vlgmr.msra.gmra.mxu1 %v260_v34  ;;  %v617_v33 = vsub.s32 0, %v616_v28 }
  0x6c   : > { %378 = vmatprep.mubr.f32.mxu0 %v1242_v0  ;;  %474 = vmatprep.mubr.f32.mxu1 %v1242_v0 }
  0x6f   : > { %379 = vmatmul.mubr.f32.gmra.mxu0 %v245_v35  ;;  %475 = vmatmul.mubr.f32.gmra.mxu1 %v261_v36  ;;  %v613_v36 = vld [vmem:[%s1658_s2] sm:$0x3] }
  0x70   : > { %384 = vmatprep.mubr.f32.mxu0 %v1242_v0  ;;  %480 = vmatprep.mubr.f32.mxu1 %v1242_v0 }
  0x73   : > { %385 = vmatmul.mubr.f32.gmra.mxu0 %v246_v37  ;;  %481 = vmatmul.mubr.f32.gmra.mxu1 %v262_v38 }
  0x74   : > { %390 = vmatprep.mubr.f32.mxu0 %v1242_v0  ;;  %486 = vmatprep.mubr.f32.mxu1 %v1242_v0 }
  0x77   : > { %391 = vmatmul.mubr.f32.gmra.mxu0 %v247_v39  ;;  %487 = vmatmul.mubr.f32.gmra.mxu1 %v263_v40 }
  0x78   : > { %396 = vmatprep.mubr.f32.mxu0 %v1242_v0  ;;  %492 = vmatprep.mubr.f32.mxu1 %v1242_v0 }
  0x7b   : > { %397 = vmatmul.mubr.f32.gmra.mxu0 %v248_v41  ;;  %493 = vmatmul.mubr.f32.gmra.mxu1 %v264_v42  ;;  %v1516_v41 = vrot.slane %v613_v36, %v617_v33 }
  0x7c   : > { %402 = vmatprep.mubr.f32.mxu0 %v1242_v0  ;;  %498 = vmatprep.mubr.f32.mxu1 %v1242_v0 }
  0x7f   : > { %403 = vmatmul.mubr.f32.gmra.mxu0 %v249_v43  ;;  %499 = vmatmul.mubr.f32.gmra.mxu1 %v265_v44  ;;  %v621_v44 = vsub.s32 1, %v616_v28 }
  0x80   : > { %408 = vmatprep.mubr.f32.mxu0 %v1242_v0  ;;  %504 = vmatprep.mubr.f32.mxu1 %v1242_v0 }
  0x83   : > { %409 = vmatmul.mubr.f32.gmra.mxu0 %v250_v45  ;;  %505 = vmatmul.mubr.f32.gmra.mxu1 %v266_v46 }
  0x84   : > { %414 = vmatprep.mubr.f32.mxu0 %v1242_v0  ;;  %510 = vmatprep.mubr.f32.mxu1 %v1242_v0 }
  0x87   : > { %415 = vmatmul.mubr.f32.gmra.mxu0 %v251_v47  ;;  %511 = vmatmul.mubr.f32.gmra.mxu1 %v267_v48 }
  0x88   : > { %420 = vmatprep.mubr.f32.mxu0 %v1242_v0  ;;  %516 = vmatprep.mubr.f32.mxu1 %v1242_v0 }
  0x8b   : > { %421 = vmatmul.mubr.f32.gmra.mxu0 %v252_v49  ;;  %517 = vmatmul.mubr.f32.gmra.mxu1 %v268_v50 }
  0x8c   : > { %426 = vmatprep.mubr.f32.mxu0 %v1242_v0  ;;  %522 = vmatprep.mubr.f32.mxu1 %v1242_v0 }
  0x8f   : > { %427 = vmatmul.mubr.f32.gmra.mxu0 %v253_v51  ;;  %523 = vmatmul.mubr.f32.gmra.mxu1 %v269_v52 }
  0x90   : > { %432 = vmatprep.mubr.f32.mxu0 %v1242_v0  ;;  %528 = vmatprep.mubr.f32.mxu1 %v1242_v0 }
  0x93   : > { %433 = vmatmul.mubr.f32.gmra.mxu0 %v254_v53  ;;  %529 = vmatmul.mubr.f32.gmra.mxu1 %v270_v54  ;;  %v1519_v54 = vrot.slane %v613_v36, %v621_v44 }
  0x94   : > { %438 = vmatprep.mubr.f32.mxu0 %v1242_v0  ;;  %534 = vmatprep.mubr.f32.mxu1 %v1242_v0 }
  0x97   : > { %439 = vmatmul.mubr.f32.gmra.mxu0 %v255_v55  ;;  %535 = vmatmul.mubr.f32.gmra.mxu1 %v271_v56 }
  0x98   : > { %444 = vmatprep.mubr.f32.mxu0 %v1242_v0  ;;  %540 = vmatprep.mubr.f32.mxu1 %v1242_v0 }
  0x9b   : > { %445 = vmatmul.mubr.f32.gmra.mxu0 %v256_v57  ;;  %541 = vmatmul.mubr.f32.gmra.mxu1 %v272_v58 }
  0x9c   : > { %450 = vmatprep.mubr.f32.mxu0 %v1242_v0  ;;  %546 = vmatprep.mubr.f32.mxu1 %v1242_v0 }
  0x9f   : > { %451 = vmatmul.mubr.f32.gmra.mxu0 %v257_v59  ;;  %547 = vmatmul.mubr.f32.gmra.mxu1 %v273_v60 }
  0xa0   : > { %456 = vmatprep.mubr.f32.mxu0 %v1242_v0  ;;  %552 = vmatprep.mubr.f32.mxu1 %v1242_v0 }
  0xa3   : > { %457 = vmatmul.mubr.f32.gmra.mxu0 %v258_v61  ;;  %553 = vmatmul.mubr.f32.gmra.mxu1 %v274_v62 }
  0xa4   : > { %462 = vmatprep.mubr.f32.mxu0 %v1242_v0  ;;  %558 = vmatprep.mubr.f32.mxu1 %v1242_v0 }
  0xa7   : > { %463 = vmatmul.mubr.f32.gmra.mxu0 %v259_v63  ;;  %559 = vmatmul.mubr.f32.gmra.mxu1 %v275_v1 }
 0x12b   : > { %v374_v2 = vpop.f32.mrf.mxu0  ;;  %v470_v3 = vpop.f32.mrf.mxu1 }
 0x12d   : > { %v376_v4 = vpop.f32.mrf.mxu0  ;;  %v472_v5 = vpop.f32.mrf.mxu1 }
 0x12f   : > { %v380_v6 = vpop.f32.mrf.mxu0  ;;  %v476_v7 = vpop.f32.mrf.mxu1 }
 0x131   : > { %v382_v8 = vpop.f32.mrf.mxu0  ;;  %v478_v9 = vpop.f32.mrf.mxu1 }
 0x133   : > { %v1465_v10 = vpop.f32.mrf.mxu0  ;;  %v1467_v11 = vpop.f32.mrf.mxu1 }
 0x135   : > { %v1469_v12 = vpop.f32.mrf.mxu0  ;;  %v1471_v13 = vpop.f32.mrf.mxu1 }
 0x137   : > { %v1473_v0 = vpop.f32.mrf.mxu0  ;;  %v1475_v14 = vpop.f32.mrf.mxu1 }
 0x139   : > { %v1477_v15 = vpop.f32.mrf.mxu0  ;;  %v1479_v16 = vpop.f32.mrf.mxu1 }
 0x13b   : > { %v1481_v17 = vpop.f32.mrf.mxu0  ;;  %v1483_v18 = vpop.f32.mrf.mxu1 }
 0x13d   : > { %v1485_v19 = vpop.f32.mrf.mxu0  ;;  %v1487_v20 = vpop.f32.mrf.mxu1 }
 0x13f   : > { %v1489_v21 = vpop.f32.mrf.mxu0  ;;  %v1491_v22 = vpop.f32.mrf.mxu1 }
 0x141   : > { %v1493_v24 = vpop.f32.mrf.mxu0  ;;  %v1495_v25 = vpop.f32.mrf.mxu1 }
 0x143   : > { %v1497_v26 = vpop.f32.mrf.mxu0  ;;  %v1499_v27 = vpop.f32.mrf.mxu1 }
 0x145   : > { %v1501_v29 = vpop.f32.mrf.mxu0  ;;  %v1503_v30 = vpop.f32.mrf.mxu1 }
 0x147   : > { %v1505_v31 = vpop.f32.mrf.mxu0  ;;  %v1507_v32 = vpop.f32.mrf.mxu1 }
 0x149   : > { %v1509_v34 = vpop.f32.mrf.mxu0  ;;  %v1511_v35 = vpop.f32.mrf.mxu1 }
 0x14b   : > { %v422_v37 = vpop.f32.mrf.mxu0  ;;  %v518_v38 = vpop.f32.mrf.mxu1 }
 0x14c   : > { %v565_v39 = vmax.f32 %v374_v2, %v422_v37  ;;  %v581_v40 = vmax.f32 %v470_v3, %v518_v38 }
 0x14d   : > { %v424_v42 = vpop.f32.mrf.mxu0  ;;  %v520_v43 = vpop.f32.mrf.mxu1 }
 0x14e   : > { %v566_v45 = vmax.f32 %v376_v4, %v424_v42  ;;  %v582_v46 = vmax.f32 %v472_v5, %v520_v43  ;;  %v597_v47 = vmax.f32 %v565_v39, %v581_v40 }
 0x14f   : > { %v428_v48 = vpop.f32.mrf.mxu0  ;;  %v524_v49 = vpop.f32.mrf.mxu1 }
 0x150   : > { %v567_v50 = vmax.f32 %v380_v6, %v428_v48  ;;  %v583_v51 = vmax.f32 %v476_v7, %v524_v49  ;;  %v625_v52 = vadd.f32 %v1516_v41, %v597_v47  ;;  %v598_v53 = vmax.f32 %v566_v45, %v582_v46 }
 0x151   : > { %v430_v55 = vpop.f32.mrf.mxu0  ;;  %v526_v56 = vpop.f32.mrf.mxu1 }
 0x152   : > { %v599_v57 = vmax.f32 %v567_v50, %v583_v51  ;;  %v568_v58 = vmax.f32 %v382_v8, %v430_v55  ;;  %v584_v59 = vmax.f32 %v478_v9, %v526_v56  ;;  %641 = vxpose.xlu0.b32.start [1/8] (short) %v625_v52, 128  ;;  %v626_v3 = vadd.f32 %v1519_v54, %v598_v53 }
 0x153   : > { %v434_v60 = vpop.f32.mrf.mxu0  ;;  %v530_v61 = vpop.f32.mrf.mxu1 }
 0x154   : > { %v600_v62 = vmax.f32 %v568_v58, %v584_v59  ;;  %v569_v63 = vmax.f32 %v1465_v10, %v434_v60  ;;  %v585_v1 = vmax.f32 %v1467_v11, %v530_v61  ;;  %v627_v2 = vadd.f32 %v1516_v41, %v599_v57 }
 0x155   : > { %v436_v4 = vpop.f32.mrf.mxu0  ;;  %v532_v5 = vpop.f32.mrf.mxu1 }
 0x156   : > { %v628_v6 = vadd.f32 %v1519_v54, %v600_v62  ;;  %v601_v7 = vmax.f32 %v569_v63, %v585_v1  ;;  %v570_v8 = vmax.f32 %v1469_v12, %v436_v4  ;;  %v586_v9 = vmax.f32 %v1471_v13, %v532_v5  ;;  %642 = vxpose.xlu0.b32.cont [2/8] (short) %v627_v2, 128 }
 0x157   : > { %v440_v23 = vpop.f32.mrf.mxu0  ;;  %v536_v28 = vpop.f32.mrf.mxu1 }
 0x158   : > { %v996_v33 = vpack.c.bf16 %v628_v6, %v626_v3  ;;  %v571_v10 = vmax.f32 %v1473_v0, %v440_v23  ;;  %v587_v11 = vmax.f32 %v1475_v14, %v536_v28  ;;  %v602_v36 = vmax.f32 %v570_v8, %v586_v9 }
 0x159   : > { %v442_v37 = vpop.f32.mrf.mxu0  ;;  %v538_v38 = vpop.f32.mrf.mxu1  ;;  %v629_v39 = vadd.f32 %v1516_v41, %v601_v7 }
 0x15a   : > { %997 = vst [vmem:[%s1532_s26] sm:$0xff] %v996_v33   ;;  %v603_v12 = vmax.f32 %v571_v10, %v587_v11  ;;  %v572_v13 = vmax.f32 %v1477_v15, %v442_v37  ;;  %v588_v40 = vmax.f32 %v1479_v16, %v538_v38  ;;  %v630_v46 = vadd.f32 %v1519_v54, %v602_v36 }
 0x15b   : > { %643 = vxpose.xlu0.b32.cont [3/8] (short) %v629_v39, 128  ;;  %v446_v42 = vpop.f32.mrf.mxu0  ;;  %v542_v43 = vpop.f32.mrf.mxu1 }
 0x15c   : > { %v604_v0 = vmax.f32 %v572_v13, %v588_v40  ;;  %v573_v14 = vmax.f32 %v1481_v17, %v446_v42  ;;  %v589_v44 = vmax.f32 %v1483_v18, %v542_v43  ;;  %v631_v45 = vadd.f32 %v1516_v41, %v603_v12 }
 0x15d   : > { %v448_v47 = vpop.f32.mrf.mxu0  ;;  %v544_v48 = vpop.f32.mrf.mxu1 }
 0x15e   : > { %v632_v49 = vadd.f32 %v1519_v54, %v604_v0  ;;  %v605_v15 = vmax.f32 %v573_v14, %v589_v44  ;;  %v574_v16 = vmax.f32 %v1485_v19, %v448_v47  ;;  %v590_v50 = vmax.f32 %v1487_v20, %v544_v48 }
 0x15f   : > { %644 = vxpose.xlu0.b32.cont [4/8] (short) %v631_v45, 128  ;;  %v452_v51 = vpop.f32.mrf.mxu0  ;;  %v548_v52 = vpop.f32.mrf.mxu1 }
 0x160   : > { %v1001_v17 = vpack.c.bf16 %v632_v49, %v630_v46  ;;  %v575_v18 = vmax.f32 %v1489_v21, %v452_v51  ;;  %v591_v53 = vmax.f32 %v1491_v22, %v548_v52  ;;  %v606_v55 = vmax.f32 %v574_v16, %v590_v50 }
 0x161   : > { %v454_v56 = vpop.f32.mrf.mxu0  ;;  %v550_v57 = vpop.f32.mrf.mxu1  ;;  %v633_v58 = vadd.f32 %v1516_v41, %v605_v15 }
 0x162   : > { %1013 = vst [vmem:[%s1532_s26 + $0x8] sm:$0xff] %v1001_v17   ;;  %v607_v59 = vmax.f32 %v575_v18, %v591_v53  ;;  %v576_v60 = vmax.f32 %v1493_v24, %v454_v56  ;;  %v592_v19 = vmax.f32 %v1495_v25, %v550_v57  ;;  %v634_v1 = vadd.f32 %v1519_v54, %v606_v55 }
 0x163   : > { %645 = vxpose.xlu0.b32.cont [5/8] (short) %v633_v58, 128  ;;  %v458_v20 = vpop.f32.mrf.mxu0  ;;  %v554_v61 = vpop.f32.mrf.mxu1 }
 0x164   : > { %v608_v62 = vmax.f32 %v576_v60, %v592_v19  ;;  %v577_v63 = vmax.f32 %v1497_v26, %v458_v20  ;;  %v593_v21 = vmax.f32 %v1499_v27, %v554_v61  ;;  %v635_v22 = vadd.f32 %v1516_v41, %v607_v59 }
 0x165   : > { %v460_v2 = vpop.f32.mrf.mxu0  ;;  %v556_v3 = vpop.f32.mrf.mxu1 }
 0x166   : > { %v636_v4 = vadd.f32 %v1519_v54, %v608_v62  ;;  %v609_v24 = vmax.f32 %v577_v63, %v593_v21  ;;  %v578_v25 = vmax.f32 %v1501_v29, %v460_v2  ;;  %v594_v5 = vmax.f32 %v1503_v30, %v556_v3 }
 0x167   : > { %646 = vxpose.xlu0.b32.cont [6/8] (short) %v635_v22, 128  ;;  %v464_v6 = vpop.f32.mrf.mxu0  ;;  %v560_v7 = vpop.f32.mrf.mxu1 }
 0x168   : > { %v1006_v26 = vpack.c.bf16 %v636_v4, %v634_v1  ;;  %v579_v27 = vmax.f32 %v1505_v31, %v464_v6  ;;  %v595_v8 = vmax.f32 %v1507_v32, %v560_v7  ;;  %v637_v28 = vadd.f32 %v1516_v41, %v609_v24 }
 0x169   : > { %v466_v9 = vpop.f32.mrf.mxu0  ;;  %v562_v23 = vpop.f32.mrf.mxu1  ;;  %v610_v33 = vmax.f32 %v578_v25, %v594_v5 }
 0x16a   : > { %1014 = vst [vmem:[%s1532_s26 + $0x10] sm:$0xff] %v1006_v26   ;;  %v611_v29 = vmax.f32 %v579_v27, %v595_v8  ;;  %v580_v30 = vmax.f32 %v1509_v34, %v466_v9  ;;  %v596_v10 = vmax.f32 %v1511_v35, %v562_v23 }
 0x16b   : > { %647 = vxpose.xlu0.b32.cont [7/8] (short) %v637_v28, 128  ;;  %v638_v11 = vadd.f32 %v1519_v54, %v610_v33 }
 0x16c   : > { %v612_v31 = vmax.f32 %v580_v30, %v596_v10  ;;  %v639_v32 = vadd.f32 %v1516_v41, %v611_v29 }
 0x16e   : > { %v640_v36 = vadd.f32 %v1519_v54, %v612_v31 }
 0x16f   : > { %648 = vxpose.xlu0.b32.end [8/8] (short) %v639_v32, 128 }
 0x170   : > { %v1011_v37 = vpack.c.bf16 %v640_v36, %v638_v11 }
 0x172   : > { %1015 = vst [vmem:[%s1532_s26 + $0x18] sm:$0xff] %v1011_v37  }
 0x173   : > { %1179 = shalt.err (!%p1176_p0)
}
 0x174   : > { %s1180_s7 = scalar_lea.hbm %s1574_s13, 512  ;;  %s1184_s23 = scalar_lea.hbm %s1660_s4, 1024 }
 0x175   : > { %p1181_p5 = scmp.ne.s32.totalorder %s1574_s13, %s1180_s7  ;;  %p1185_p4 = scmp.lt.s32.totalorder %s1574_s13, %s1660_s4 }
 0x176   : > { %p1186_p6 = scmp.lt.s32.totalorder %s1184_s23, %s1180_s7 }
 0x177   : > { %p1182_p9 = pnand %p1181_p5, %p1676_p11 }
 0x178   : > { %p1187_p8 = por %p1186_p6, %p1185_p4 }
 0x179   : > { %p1183_p1 = pneg %p1182_p9 }
 0x17b   : > { %p1188_p3 = pnand %p1187_p8, %p1183_p1 }
 0x17d   : > { %1191 = shalt.err (!%p1188_p3)
}
 0x17e   : > { %s1244_s29 = smov 64   ;;  %s1245_s12 = smov 4   ;;  %vm737_vm0 = vcmask 519168  }
 0x17f   : > { %1054 = dma.vmem_to_hbm [thread:$0]  (%p1676_p11), %s1568_s28, 512, %s1574_s13, %s800_s14, %s1244_s29, %s1244_s29, %s1245_s12  }
 0x180   : > { %p239_p7 = scmp.lt.s32.totalorder %s1292_s19, 1 }
 0x182   : > { %s1684_s19 = smov (!%p239_p7, %s1292_s19), 1 }
 0x183   : > { %s967_s11 = sshll.u32 %s1684_s19, 6 }
 0x184   : > { %s1604_s30 = scalar_lea.vmem %s1659_s3, %s967_s11 }
 0x1cf   : > { %v657_v34 = vpop.trf.xlu0 }
 0x1d0   : > { %v968_v35 = vpack.c.bf16 %v657_v34, %v657_v34 }
 0x1d2   : > { %738 = vst.msk [vmem:[%s1604_s30] sm:$0xf] %vm737_vm0, %v968_v35 }
 0x1d3   : > { %v658_v41 = vpop.trf.xlu0 }
 0x1d4   : > { %v969_v54 = vpack.c.bf16 %v658_v41, %v658_v41 }
 0x1d6   : > { %739 = vst.msk [vmem:[%s1604_s30 + $0x4] sm:$0xf] %vm737_vm0, %v969_v54 }
 0x1d7   : > { %v659_v38 = vpop.trf.xlu0 }
 0x1d8   : > { %v970_v39 = vpack.c.bf16 %v659_v38, %v659_v38 }
 0x1da   : > { %740 = vst.msk [vmem:[%s1604_s30 + $0x8] sm:$0xf] %vm737_vm0, %v970_v39 }
 0x1db   : > { %v660_v12 = vpop.trf.xlu0 }
 0x1dc   : > { %v971_v13 = vpack.c.bf16 %v660_v12, %v660_v12 }
 0x1de   : > { %741 = vst.msk [vmem:[%s1604_s30 + $0xc] sm:$0xf] %vm737_vm0, %v971_v13 }
 0x1df   : > { %v661_v40 = vpop.trf.xlu0 }
 0x1e0   : > { %v972_v42 = vpack.c.bf16 %v661_v40, %v661_v40 }
 0x1e2   : > { %742 = vst.msk [vmem:[%s1604_s30 + $0x10] sm:$0xf] %vm737_vm0, %v972_v42 }
 0x1e3   : > { %v662_v43 = vpop.trf.xlu0 }
 0x1e4   : > { %v973_v0 = vpack.c.bf16 %v662_v43, %v662_v43 }
 0x1e6   : > { %743 = vst.msk [vmem:[%s1604_s30 + $0x14] sm:$0xf] %vm737_vm0, %v973_v0 }
 0x1e7   : > { %v663_v14 = vpop.trf.xlu0 }
 0x1e8   : > { %v974_v44 = vpack.c.bf16 %v663_v14, %v663_v14 }
 0x1ea   : > { %744 = vst.msk [vmem:[%s1604_s30 + $0x18] sm:$0xf] %vm737_vm0, %v974_v44 }
 0x1eb   : > { %v664_v45 = vpop.trf.xlu0 }
 0x1ec   : > { %v975_v46 = vpack.c.bf16 %v664_v45, %v664_v45 }
 0x1ee   : > { %745 = vst.msk [vmem:[%s1604_s30 + $0x1c] sm:$0xf] %vm737_vm0, %v975_v46 }
 0x1ef   : > { %v665_v47 = vpop.trf.xlu0 }
 0x1f0   : > { %v976_v48 = vpack.c.bf16 %v665_v47, %v665_v47 }
 0x1f2   : > { %746 = vst.msk [vmem:[%s1604_s30 + $0x20] sm:$0xf] %vm737_vm0, %v976_v48 }
 0x1f3   : > { %v666_v49 = vpop.trf.xlu0 }
 0x1f4   : > { %v977_v15 = vpack.c.bf16 %v666_v49, %v666_v49 }
 0x1f6   : > { %747 = vst.msk [vmem:[%s1604_s30 + $0x24] sm:$0xf] %vm737_vm0, %v977_v15 }
 0x1f7   : > { %v667_v16 = vpop.trf.xlu0 }
 0x1f8   : > { %v978_v50 = vpack.c.bf16 %v667_v16, %v667_v16 }
 0x1fa   : > { %748 = vst.msk [vmem:[%s1604_s30 + $0x28] sm:$0xf] %vm737_vm0, %v978_v50 }
 0x1fb   : > { %v668_v51 = vpop.trf.xlu0 }
 0x1fc   : > { %v979_v52 = vpack.c.bf16 %v668_v51, %v668_v51 }
 0x1fe   : > { %749 = vst.msk [vmem:[%s1604_s30 + $0x2c] sm:$0xf] %vm737_vm0, %v979_v52 }
 0x1ff   : > { %v669_v17 = vpop.trf.xlu0 }
 0x200   : > { %v980_v18 = vpack.c.bf16 %v669_v17, %v669_v17 }
 0x202   : > { %750 = vst.msk [vmem:[%s1604_s30 + $0x30] sm:$0xf] %vm737_vm0, %v980_v18 }
 0x203   : > { %v670_v53 = vpop.trf.xlu0 }
 0x204   : > { %v981_v55 = vpack.c.bf16 %v670_v53, %v670_v53 }
 0x206   : > { %751 = vst.msk [vmem:[%s1604_s30 + $0x34] sm:$0xf] %vm737_vm0, %v981_v55 }
 0x207   : > { %v671_v56 = vpop.trf.xlu0 }
 0x208   : > { %v982_v57 = vpack.c.bf16 %v671_v56, %v671_v56 }
 0x20a   : > { %752 = vst.msk [vmem:[%s1604_s30 + $0x38] sm:$0xf] %vm737_vm0, %v982_v57 }
 0x20b   : > { %v672_v58 = vpop.trf.xlu0 }
 0x20c   : > { %v983_v59 = vpack.c.bf16 %v672_v58, %v672_v58 }
 0x20e   : > { %753 = vst.msk [vmem:[%s1604_s30 + $0x3c] sm:$0xf] %vm737_vm0, %v983_v59 }
 0x20f PF: > { %s839_s19 = sand.u32 1, %s1222_s15   ;;  %p1677_p11 = scmp.ne.s32.totalorder %s1666_s22, 0 }
 0x210   : > { %p1678_p12 = scmp.ge.s32.totalorder %s1234_s18, 2  ;;  %s840_s10 = scalar_lea.sflag [#allocation4], %s839_s19 }
 0x212   : > { %p1065_p10 = pnand %p1678_p12, %p1677_p11 }
 0x214   : > { %p1066_p2 = pneg %p1065_p10 }
 0x216   : > { %1217 = dma.done.wait (%p1066_p2), %s840_s10, 512  }
 0x217   : > { %1219 = vsyncadd (%p1066_p2), %s840_s10, 4294966784  ;;  %p19_p13 = scmp.ge.s32.totalorder %s1325_s27, 4   ;;  %s1679_s15 = smov %s1226_s16 }
 0x218   : > { %s1680_s16 = smov %s1230_s17  ;;  %s1681_s17 = smov %s1342_s9 }
 0x219   : > { %s1682_s18 = smov %s1325_s27  ;;  %21 = sbr.rel (!%p19_p13) target bundleno = 6 (0x6), region = 93 }
 0x21e   :  { %845 = vsyncpa [#allocation3], 1 }
 0x21f   :  { %847 = vsyncpa [#allocation3 + $0x1], 1 }
 0x220   :  { %848 = vsyncpa [#allocation6], 1 }
 0x221   :  { %849 = vsyncpa [#allocation4], 1 }
 0x222   :  { %851 = vsyncpa [#allocation4 + $0x1], 1 }

</bundles_post_ra>
